<compile_context>
chip_gen: v7x
topology: tpu7x:2x2x1
jax: 0.10.0
libtpu: 0.0.40
codegen_flags: <defaults>
</compile_context>

<pallas_src>
import functools
from typing import NamedTuple

import jax
import jax.numpy as jnp
from jax.experimental import pallas as pl
from jax.experimental.pallas import tpu as pltpu

_LANE = 128       # lane width (last dim)
_TB_ALIGN = 16    # batch-tile alignment: bf16 sublane packing (16) also covers f32 (8)


def _round_up(x: int, m: int) -> int:
    return (x + m - 1) // m * m


class PreparedParams(NamedTuple):
    """Padded, kernel-ready parameters (built once, outside the hot loop)."""
    w1: jax.Array   # (Dp, Hp)  param_dtype
    b1: jax.Array   # (1,  Hp)  float32
    w2: jax.Array   # (Hp, Op)  param_dtype
    b2: jax.Array   # (1,  Op)  float32
    d: int          # true input features
    h: int          # true hidden units
    o: int          # true output features


def prepare_params(w1, b1, w2, b2, *, param_dtype=jnp.bfloat16) -> PreparedParams:
    """Pad D/H/O to lane-dense multiples of 128 and cast weights once.

    Zero padding keeps padded hidden units exactly 0 after bias+ReLU and padded
    output columns exactly 0, so real outputs are unaffected.

    w1: (D, Hdn), b1: (Hdn,), w2: (Hdn, O), b2: (O,)  (w's transposed vs torch).
    """
    D, Hdn = w1.shape
    O = w2.shape[1]
    Dp = _round_up(D, _LANE)
    Hp = _round_up(Hdn, _LANE)
    Op = _round_up(O, _LANE)

    w1p = jnp.zeros((Dp, Hp), param_dtype).at[:D, :Hdn].set(w1.astype(param_dtype))
    b1p = jnp.zeros((1, Hp), jnp.float32).at[:, :Hdn].set(b1.astype(jnp.float32))
    w2p = jnp.zeros((Hp, Op), param_dtype).at[:Hdn, :O].set(w2.astype(param_dtype))
    b2p = jnp.zeros((1, Op), jnp.float32).at[:, :O].set(b2.astype(jnp.float32))
    return PreparedParams(w1p, b1p, w2p, b2p, D, Hdn, O)


def _mlp_kernel(x_ref, w1_ref, b1_ref, w2_ref, b2_ref, o_ref, *, precision):
    # First linear: MXU matmul in the operands' storage dtype, f32 accumulate.
    h = jnp.dot(x_ref[...], w1_ref[...],
                preferred_element_type=jnp.float32, precision=precision)
    # Bias + ReLU epilogue in f32 on the VPU.
    h = jnp.maximum(h + b1_ref[...], 0.0)
    # Second linear: cast activations to the weight dtype (no-op on f32 path).
    y = jnp.dot(h.astype(w2_ref.dtype), w2_ref[...],
                preferred_element_type=jnp.float32, precision=precision)
    y = jnp.maximum(y + b2_ref[...], 0.0)
    # Full-lane (128-wide) unmasked store; dtype of the slab controls writeback traffic.
    o_ref[...] = y.astype(o_ref.dtype)


def _forward_padded(x_flat, pp: PreparedParams, *, block_b, precision, out_dtype):
    """Fused MLP on a lane-padded (B, Dp) input. Returns a padded (Bp, Op) slab."""
    B, Dp = x_flat.shape
    Hp = pp.w1.shape[1]
    Op = pp.w2.shape[1]

    # Batch tile: as large as block_b allows, but split large batches into >=2
    # grid steps so the "parallel" axis can shard across both v7x TensorCores.
    tb = min(_round_up(block_b, _TB_ALIGN), _round_up(pl.cdiv(B, 2), _TB_ALIGN))
    tb = max(tb, _TB_ALIGN)
    Bp = _round_up(B, tb)
    if Bp != B:
        x_flat = jnp.zeros((Bp, Dp), x_flat.dtype).at[:B].set(x_flat)
    grid = (Bp // tb,)

    x_item = x_flat.dtype.itemsize
    out_item = jnp.dtype(out_dtype).itemsize
    param_bytes = sum(int(p.size) * p.dtype.itemsize for p in (pp.w1, pp.b1, pp.w2, pp.b2))

    # Advisory cost estimate: real (unpadded) dims for flops, actual byte plan for bytes.
    flops = 2 * B * (pp.d * pp.h + pp.h * pp.o)
    bytes_accessed = Bp * Dp * x_item + param_bytes + Bp * Op * out_item

    # Double-buffered x/out tiles + resident weights; only pin a VMEM limit if a
    # very large block_b would blow the default scoped VMEM (16 MiB on v5e).
    vmem_est = 2 * (tb * Dp * x_item + tb * Op * out_item) + param_bytes
    cp_kwargs = dict(dimension_semantics=("parallel",))   # megacore on v7x
    if vmem_est > 12 * 1024 * 1024:
        cp_kwargs["vmem_limit_bytes"] = min(int(1.5 * vmem_est) + (1 << 20),
                                            120 * 1024 * 1024)

    out = pl.pallas_call(
        functools.partial(_mlp_kernel, precision=precision),
        out_shape=jax.ShapeDtypeStruct((Bp, Op), out_dtype),
        grid_spec=pl.GridSpec(
            grid=grid,
            in_specs=[
                pl.BlockSpec((tb, Dp), lambda i: (i, 0)),   # x tile per step
                pl.BlockSpec((Dp, Hp), lambda i: (0, 0)),   # weights stay resident
                pl.BlockSpec((1, Hp), lambda i: (0, 0)),
                pl.BlockSpec((Hp, Op), lambda i: (0, 0)),
                pl.BlockSpec((1, Op), lambda i: (0, 0)),
            ],
            out_specs=pl.BlockSpec((tb, Op), lambda i: (i, 0)),
        ),
        compiler_params=pltpu.CompilerParams(**cp_kwargs),
        cost_estimate=pl.CostEstimate(
            flops=flops, transcendentals=0, bytes_accessed=bytes_accessed),
    )(x_flat, pp.w1, pp.b1, pp.w2, pp.b2)
    return out


def fashion_mnist_model_v1(x, pp: PreparedParams, *, block_b=512, precision=None,
                           out_dtype=jnp.bfloat16, unpad=True):
    """Forward pass identical to the PyTorch module.

    x        : (B, C, H, W) or (B, D). For best HBM traffic the data pipeline
               should provide x in bfloat16 (fast path); f32 works too.
    pp       : output of prepare_params(). bf16 params -> fast path; f32 params
               with precision=jax.lax.Precision.HIGHEST -> exact-parity path.
    out_dtype: dtype of the kernel's output slab (bf16 halves writeback traffic).
    unpad    : if True, return (B, O); if False, return the padded (Bp, 128) slab
               (NOTE: slice/mask to O before any argmax — padded columns are 0
               and the final ReLU clamps real logits to >=0, so ties are possible).
    """
    B = x.shape[0]
    x_flat = x.reshape(B, -1)                       # nn.Flatten() — pure layout glue
    assert x_flat.shape[1] == pp.d, "input feature size mismatch"
    Dp = pp.w1.shape[0]
    if Dp != pp.d:                                  # lane-pad K dim (e.g. 784 -> 896)
        x_flat = jnp.zeros((B, Dp), x_flat.dtype).at[:, :pp.d].set(x_flat)
    out = _forward_padded(x_flat, pp, block_b=block_b, precision=precision,
                          out_dtype=out_dtype)
    if unpad:
        out = out[:B, :pp.o]                        # single fused slice (batch + lanes)
    return out


def _init_linear(key, fan_in, fan_out, dtype=jnp.float32):
    """Deterministic init mimicking torch.nn.Linear default (U(-k, k), k=1/sqrt(fan_in))."""
    kw, kb = jax.random.split(key)
    bound = 1.0 / jnp.sqrt(fan_in)
    w = jax.random.uniform(kw, (fan_in, fan_out), dtype, -bound, bound)
    b = jax.random.uniform(kb, (fan_out,), dtype, -bound, bound)
    return w, b


def _ref_bf16(x_flat, w1, b1, w2, b2):
    """Pure-JAX reference with the same bf16-operand / f32-accumulate recipe."""
    h = jnp.dot(x_flat.astype(jnp.bfloat16), w1.astype(jnp.bfloat16),
                preferred_element_type=jnp.float32)
    h = jnp.maximum(h + b1, 0.0)
    y = jnp.dot(h.astype(jnp.bfloat16), w2.astype(jnp.bfloat16),
                preferred_element_type=jnp.float32)
    return jnp.maximum(y + b2, 0.0)


if __name__ == "__main__":
    # Small shapes consistent with the module's forward:
    # batch=2 images of (C=1, H=16, W=16) -> input_shape=256, hidden=32, out=10.
    B, C, H, W = 2, 1, 16, 16
    input_shape = C * H * W
    hidden_units = 32
    output_shape = 10

    key = jax.random.PRNGKey(0)
    kx, k1, k2, kx2 = jax.random.split(key, 4)

    x = jax.random.normal(kx, (B, C, H, W), dtype=jnp.float32)
    w1, b1 = _init_linear(k1, input_shape, hidden_units)
    w2, b2 = _init_linear(k2, hidden_units, output_shape)

    # ---- Fast path: bf16 params, bf16 x from the "data pipeline", bf16 output.
    pp_bf16 = prepare_params(w1, b1, w2, b2, param_dtype=jnp.bfloat16)
    x_bf16 = x.astype(jnp.bfloat16)   # done once at the pipeline boundary, not per step
    out = fashion_mnist_model_v1(x_bf16, pp_bf16)
    out = jax.block_until_ready(out)
    assert out.shape == (B, output_shape)
    assert out.dtype == jnp.bfloat16

    x_flat = x.reshape(B, -1)
    ref_bf = _ref_bf16(x_flat, w1, b1, w2, b2)
    ref_f32 = jnp.maximum(jnp.maximum(x_flat @ w1 + b1, 0.0) @ w2 + b2, 0.0)
    out_f32 = out.astype(jnp.float32)
    assert jnp.allclose(out_f32, ref_bf, atol=2e-2, rtol=2e-2)
    assert jnp.allclose(out_f32, ref_f32, atol=6e-2, rtol=6e-2)

    # ---- Non-aligned larger batch: exercises the multi-step tiled grid
    # (tb=160, Bp=320, grid=(2,)) and the batch-padding path.
    B2 = 300
    x2 = jax.random.normal(kx2, (B2, C, H, W), dtype=jnp.float32)
    out2 = jax.block_until_ready(
        fashion_mnist_model_v1(x2.astype(jnp.bfloat16), pp_bf16))
    assert out2.shape == (B2, output_shape)
    ref2 = _ref_bf16(x2.reshape(B2, -1), w1, b1, w2, b2)
    assert jnp.allclose(out2.astype(jnp.float32), ref2, atol=2e-2, rtol=2e-2)

    # ---- Exact-parity path: f32 operands + HIGHEST matmul precision, f32 output.
    # Still memory-bound, so this costs ~nothing in wall time.
    pp_f32 = prepare_params(w1, b1, w2, b2, param_dtype=jnp.float32)
    out_hp = jax.block_until_ready(
        fashion_mnist_model_v1(x, pp_f32, precision=jax.lax.Precision.HIGHEST,
                               out_dtype=jnp.float32))
    assert out_hp.shape == (B, output_shape) and out_hp.dtype == jnp.float32
    assert jnp.allclose(out_hp, ref_f32, atol=1e-3, rtol=1e-3)

    print("KERNEL_OK")
</pallas_src>

<mosaic_0001>
module attributes {stable_mosaic.version = 11 : i64} {
  func.func @_mlp_kernel(%arg0: i32, %arg1: memref<16x256xbf16, #tpu.memory_space<vmem>>, %arg2: memref<256x128xbf16, #tpu.memory_space<vmem>>, %arg3: memref<1x128xf32, #tpu.memory_space<vmem>>, %arg4: memref<128x128xbf16, #tpu.memory_space<vmem>>, %arg5: memref<1x128xf32, #tpu.memory_space<vmem>>, %arg6: memref<16x128xbf16, #tpu.memory_space<vmem>>) attributes {dimension_semantics = [#tpu.dimension_semantics<parallel>], iteration_bounds = array<i64: 1>, scalar_prefetch = 0 : i64, scratch_operands = 0 : i64, tpu.core_type = #tpu.core_type<tc>, window_params = [{transform_indices = @transform_0, window_bounds = array<i64: 16, 256>}, {pipeline_mode = #tpu.pipeline_mode<synchronous>, transform_indices = @transform_1, window_bounds = array<i64: 256, 128>}, {pipeline_mode = #tpu.pipeline_mode<synchronous>, transform_indices = @transform_2, window_bounds = array<i64: 1, 128>}, {pipeline_mode = #tpu.pipeline_mode<synchronous>, transform_indices = @transform_3, window_bounds = array<i64: 128, 128>}, {pipeline_mode = #tpu.pipeline_mode<synchronous>, transform_indices = @transform_4, window_bounds = array<i64: 1, 128>}, {transform_indices = @transform_5, window_bounds = array<i64: 16, 128>}]} {
    %c0 = arith.constant 0 : index
    %c0_0 = arith.constant 0 : index
    %0 = vector.load %arg1[%c0, %c0_0] : memref<16x256xbf16, #tpu.memory_space<vmem>>, vector<16x256xbf16>
    %c0_1 = arith.constant 0 : index
    %c0_2 = arith.constant 0 : index
    %1 = vector.load %arg2[%c0_1, %c0_2] : memref<256x128xbf16, #tpu.memory_space<vmem>>, vector<256x128xbf16>
    %cst = arith.constant dense<0.000000e+00> : vector<16x128xf32>
    %2 = tpu.matmul %0, %1, %cst {dimension_numbers = #tpu.dot_dimension_numbers<[1], [0], [0], [1], [0, 0, 1, 1], [], []>} : vector<16x256xbf16>, vector<256x128xbf16>, vector<16x128xf32> -> vector<16x128xf32>
    %c0_3 = arith.constant 0 : index
    %c0_4 = arith.constant 0 : index
    %3 = vector.load %arg3[%c0_3, %c0_4] : memref<1x128xf32, #tpu.memory_space<vmem>>, vector<1x128xf32>
    %4 = vector.broadcast %3 : vector<1x128xf32> to vector<16x128xf32>
    %5 = arith.addf %2, %4 : vector<16x128xf32>
    %cst_5 = arith.constant 0.000000e+00 : f32
    %6 = vector.broadcast %cst_5 : f32 to vector<16x128xf32>
    %7 = arith.maximumf %5, %6 : vector<16x128xf32>
    %8 = arith.truncf %7 : vector<16x128xf32> to vector<16x128xbf16>
    %c0_6 = arith.constant 0 : index
    %c0_7 = arith.constant 0 : index
    %9 = vector.load %arg4[%c0_6, %c0_7] : memref<128x128xbf16, #tpu.memory_space<vmem>>, vector<128x128xbf16>
    %cst_8 = arith.constant dense<0.000000e+00> : vector<16x128xf32>
    %10 = tpu.matmul %8, %9, %cst_8 {dimension_numbers = #tpu.dot_dimension_numbers<[1], [0], [0], [1], [0, 0, 1, 1], [], []>} : vector<16x128xbf16>, vector<128x128xbf16>, vector<16x128xf32> -> vector<16x128xf32>
    %c0_9 = arith.constant 0 : index
    %c0_10 = arith.constant 0 : index
    %11 = vector.load %arg5[%c0_9, %c0_10] : memref<1x128xf32, #tpu.memory_space<vmem>>, vector<1x128xf32>
    %12 = vector.broadcast %11 : vector<1x128xf32> to vector<16x128xf32>
    %13 = arith.addf %10, %12 : vector<16x128xf32>
    %cst_11 = arith.constant 0.000000e+00 : f32
    %14 = vector.broadcast %cst_11 : f32 to vector<16x128xf32>
    %15 = arith.maximumf %13, %14 : vector<16x128xf32>
    %16 = arith.truncf %15 : vector<16x128xf32> to vector<16x128xbf16>
    %c0_12 = arith.constant 0 : index
    %c0_13 = arith.constant 0 : index
    %17 = vector.load %arg6[%c0_12, %c0_13] : memref<16x128xbf16, #tpu.memory_space<vmem>>, vector<16x128xbf16>
    tpu.vector_store %arg6[%c0_12, %c0_13], %16 {strides = array<i32>} : memref<16x128xbf16, #tpu.memory_space<vmem>>, vector<16x128xbf16>,
    return
  }
  func.func @transform_0(%arg0: i32) -> (i32, i32) {
    %c0_i32 = arith.constant 0 : i32
    %c0_i32_0 = arith.constant 0 : i32
    return %arg0, %c0_i32 : i32, i32
  }
  func.func @transform_1(%arg0: i32) -> (i32, i32) {
    %c0_i32 = arith.constant 0 : i32
    %c0_i32_0 = arith.constant 0 : i32
    %c0_i32_1 = arith.constant 0 : i32
    return %c0_i32, %c0_i32_0 : i32, i32
  }
  func.func @transform_2(%arg0: i32) -> (i32, i32) {
    %c0_i32 = arith.constant 0 : i32
    %c0_i32_0 = arith.constant 0 : i32
    %c0_i32_1 = arith.constant 0 : i32
    return %c0_i32, %c0_i32_0 : i32, i32
  }
  func.func @transform_3(%arg0: i32) -> (i32, i32) {
    %c0_i32 = arith.constant 0 : i32
    %c0_i32_0 = arith.constant 0 : i32
    %c0_i32_1 = arith.constant 0 : i32
    return %c0_i32, %c0_i32_0 : i32, i32
  }
  func.func @transform_4(%arg0: i32) -> (i32, i32) {
    %c0_i32 = arith.constant 0 : i32
    %c0_i32_0 = arith.constant 0 : i32
    %c0_i32_1 = arith.constant 0 : i32
    return %c0_i32, %c0_i32_0 : i32, i32
  }
  func.func @transform_5(%arg0: i32) -> (i32, i32) {
    %c0_i32 = arith.constant 0 : i32
    %c0_i32_0 = arith.constant 0 : i32
    return %arg0, %c0_i32 : i32, i32
  }
}

</mosaic_0001>

<bundles_post_ra>
// kernel: tpu_custom_call.1
= control target key start
LH: loop header
LB: loop body
LE: loop exit
PB: predicated region body
PF: predicated region fallthrough
CT: control target
= control target key end

     0   :  { %10 = vsyncpa [#allocation3], 0  ;;  %s718_s0 = inlined_call_operand.hbm [shape: bf16[16,256], index: 0, kind: input, shape index: {}]   ;;  %s719_s1 = inlined_call_operand.hbm [shape: bf16[256,128], index: 1, kind: input, shape index: {}]   ;;  %s720_s2 = inlined_call_operand.vmem [shape: f32[1,128], index: 2, kind: input, shape index: {}]   ;;  %s721_s3 = inlined_call_operand.hbm [shape: bf16[128,128], index: 3, kind: input, shape index: {}]   ;;  %s722_s4 = inlined_call_operand.vmem [shape: f32[1,128], index: 4, kind: input, shape index: {}]   ;;  %s723_s5 = inlined_call_operand.hbm [shape: bf16[16,128], index: 5, kind: output, shape index: {}]  }
   0x1   :  { %11 = vsyncpa [#allocation6], 0 }
   0x2   :  { %12 = vsyncpa [#allocation4], 0  ;;  %s615_s18 = smov [#allocation5]   ;;  %s521_s22 = scalar_lea.hbm %s719_s1, 2048 }
   0x3   :  { %s30_s19 = sshll.u32 %s615_s18, 4  ;;  %p522_p0 = scmp.ne.s32.totalorder %s719_s1, %s521_s22  ;;  %s31_s19 = int_to_ptr.vmem [resolvable:$true] %s30_s19 }
   0x4   :  { %p525_p1 = scmp.lt.u32.totalorder %s521_s22, %s719_s1 }
   0x6   :  { %p527_p2 = pnand %p525_p1, %p522_p0 }
   0x8   :  { %530 = shalt.err (!%p527_p2)
}
   0x9   :  { %s531_s27 = scalar_lea.vmem %s31_s19, 2048  ;;  %p536_p4 = scmp.lt.s32.totalorder %s31_s19, %s31_s19 }
   0xa   :  { %p532_p3 = scmp.ne.s32.totalorder %s31_s19, %s531_s27  ;;  %p537_p5 = scmp.lt.s32.totalorder %s531_s27, %s531_s27 }
   0xc   :  { %p538_p6 = por %p537_p5, %p536_p4 }
   0xe   :  { %p539_p7 = pnand %p538_p6, %p532_p3 }
  0x10   :  { %542 = shalt.err (!%p539_p7)
}
  0x11   :  { %s616_s28 = smov 64   ;;  %s617_s29 = smov 4  }
  0x12   :  { %36 = dma.hbm_to_vmem [thread:$0]  %s719_s1, 2048, %s31_s19, [#allocation6], %s616_s28, %s616_s28, %s617_s29  }
  0x13   :  { %s618_s7 = smov [#allocation2]   ;;  %s543_s11 = scalar_lea.hbm %s718_s0, 256 }
  0x14   :  { %s18_s8 = sshll.u32 %s618_s7, 4  ;;  %p544_p8 = scmp.ne.s32.totalorder %s718_s0, %s543_s11  ;;  %s19_s8 = int_to_ptr.vmem [resolvable:$true] %s18_s8 }
  0x15   :  { %p547_p9 = scmp.lt.u32.totalorder %s543_s11, %s718_s0 }
  0x17   :  { %p549_p10 = pnand %p547_p9, %p544_p8 }
  0x19   :  { %552 = shalt.err (!%p549_p10)
}
  0x1a   :  { %s553_s16 = scalar_lea.vmem %s19_s8, 256  ;;  %p558_p12 = scmp.lt.s32.totalorder %s19_s8, %s19_s8 }
  0x1b   :  { %p554_p11 = scmp.ne.s32.totalorder %s19_s8, %s553_s16  ;;  %p559_p13 = scmp.lt.s32.totalorder %s553_s16, %s553_s16 }
  0x1d   :  { %p560_p0 = por %p559_p13, %p558_p12 }
  0x1f   :  { %p561_p1 = pnand %p560_p0, %p554_p11 }
  0x21   :  { %564 = shalt.err (!%p561_p1)
}
  0x22   :  { %s619_s1 = smov 128   ;;  %s620_s17 = smov 8  }
  0x23   :  { %24 = dma.hbm_to_vmem [thread:$0]  %s718_s0, 256, %s19_s8, [#allocation3], %s619_s1, %s619_s1, %s620_s17  }
  0x24   :  { %s621_s20 = smov [#allocation7]   ;;  %s565_s24 = scalar_lea.hbm %s721_s3, 1024 }
  0x25   :  { %s44_s21 = sshll.u32 %s621_s20, 4  ;;  %p566_p2 = scmp.ne.s32.totalorder %s721_s3, %s565_s24  ;;  %s45_s21 = int_to_ptr.vmem [resolvable:$true] %s44_s21 }
  0x26   :  { %p569_p3 = scmp.lt.u32.totalorder %s565_s24, %s721_s3 }
  0x28   :  { %p571_p4 = pnand %p569_p3, %p566_p2 }
  0x2a   :  { %574 = shalt.err (!%p571_p4)
}
  0x2b   :  { %s575_s6 = scalar_lea.vmem %s45_s21, 1024  ;;  %p580_p6 = scmp.lt.s32.totalorder %s45_s21, %s45_s21 }
  0x2c   :  { %p576_p5 = scmp.ne.s32.totalorder %s45_s21, %s575_s6  ;;  %p581_p7 = scmp.lt.s32.totalorder %s575_s6, %s575_s6 }
  0x2e   :  { %p582_p8 = por %p581_p7, %p580_p6 }
  0x30   :  { %p583_p9 = pnand %p582_p8, %p576_p5 }
  0x32   :  { %586 = shalt.err (!%p583_p9)
}
  0x33   :  { %50 = dma.hbm_to_vmem [thread:$0]  %s721_s3, 1024, %s45_s21, [#allocation6], %s616_s28, %s616_s28, %s617_s29  }
  0x34   :  { %609 = dma.done.wait [#allocation3], 256  }
  0x35   :  { %610 = vsyncadd [#allocation3], 4294967040 }
  0x36   :  { %611 = dma.done.wait [#allocation6], 3072  }
  0x37   :  { %612 = vsyncadd [#allocation6], 4294964224  ;;  %v622_v0 = vmov 0.0   ;;  %v494_v1 = vld [vmem:[#allocation5 + $0x40] sm:$0xff]   ;;  %v496_v3 = vld [vmem:[#allocation5 + $0x48] sm:$0xff]   ;;  %vm623_vm0 = vmmov 0  }
  0x38   :  { %464 = vmatprep.subr.bf16.mxu1 %v622_v0  ;;  %v495_v2 = vld [vmem:[#allocation5] sm:$0xff]   ;;  %433 = vmatprep.subr.bf16.mxu0 %v494_v1  ;;  %v497_v4 = vld [vmem:[#allocation5 + $0x8] sm:$0xff]   ;;  %v498_v5 = vld [vmem:[#allocation5 + $0x50] sm:$0xff]  }
  0x39   :  { %434 = vmatpush3.bf16.msra.mxu0 %v495_v2  ;;  %v499_v6 = vld [vmem:[#allocation5 + $0x10] sm:$0xff]   ;;  %v500_v7 = vld [vmem:[#allocation5 + $0x58] sm:$0xff]   ;;  %v502_v9 = vld [vmem:[#allocation5 + $0x60] sm:$0xff]   ;;  %480 = vmatprep.mubr.msk.bf16.mxu1 %vm623_vm0, %v622_v0 }
  0x3a   :  { %435 = vmatprep.subr.bf16.mxu0 %v496_v3  ;;  %v501_v8 = vld [vmem:[#allocation5 + $0x18] sm:$0xff]   ;;  %v503_v10 = vld [vmem:[#allocation5 + $0x20] sm:$0xff]   ;;  %v504_v11 = vld [vmem:[#allocation5 + $0x68] sm:$0xff]  }
  0x3b   :  { %v505_v12 = vld [vmem:[#allocation5 + $0x28] sm:$0xff]   ;;  %v512_v13 = vld [vmem:[#allocation2 + $0x4] ss:$8 sps:$4 sm:$0xff]   ;;  %v513_v14 = vld [vmem:[#allocation7] sm:$0xff]  }
  0x3c   :  { %v506_v15 = vld [vmem:[#allocation5 + $0x70] sm:$0xff]   ;;  %242 = vmatprep.mubr.bf16.mxu0 %v512_v13  ;;  %465 = vmatpush3.bf16.msra.mxu1 %v513_v14  ;;  %v514_v16 = vld [vmem:[#allocation7 + $0x8] sm:$0xff]   ;;  %v508_v18 = vld [vmem:[#allocation5 + $0x78] sm:$0xff]  }
  0x3d   :  { %436 = vmatpush3.bf16.msra.mxu0 %v497_v4  ;;  %466 = vmatprep.subr.bf16.mxu1 %v622_v0  ;;  %v507_v17 = vld [vmem:[#allocation5 + $0x30] sm:$0xff]   ;;  %v509_v20 = vld [vmem:[#allocation5 + $0x38] sm:$0xff]   ;;  %v517_v23 = vld [vmem:[#allocation7 + $0x20] sm:$0xff]  }
  0x3e   :  { %437 = vmatprep.subr.bf16.mxu0 %v498_v5  ;;  %v515_v19 = vld [vmem:[#allocation7 + $0x10] sm:$0xff]   ;;  %v516_v21 = vld [vmem:[#allocation7 + $0x18] sm:$0xff]   ;;  %v518_v24 = vld [vmem:[#allocation7 + $0x28] sm:$0xff]  }
  0x3f   :  { %v510_v22 = vld [vmem:[#allocation2] ss:$8 sps:$4 sm:$0xff]  }
  0x40   :  { %467 = vmatpush3.bf16.msra.mxu1 %v514_v16  ;;  %v519_v25 = vld [vmem:[#allocation7 + $0x30] sm:$0xff]   ;;  %v520_v26 = vld [vmem:[#allocation7 + $0x38] sm:$0xff]  }
  0x41   :  { %438 = vmatpush3.bf16.msra.mxu0 %v499_v6  ;;  %468 = vmatprep.subr.bf16.mxu1 %v622_v0  ;;  %v396_v28 = vld [vmem:[%s720_s2] ss:$0 sm:$0xff]  ;;  %s624_s2 = smov [#allocation8]  }
  0x42   :  { %439 = vmatprep.subr.bf16.mxu0 %v500_v7  ;;  %v415_v39 = vld [vmem:[%s722_s4] ss:$0 sm:$0xff]  ;;  %s383_s11 = sshll.u32 %s624_s2, 4  ;;  %s384_s11 = int_to_ptr.vmem [resolvable:$true] %s383_s11 }
  0x43   :  { %s587_s12 = scalar_lea.vmem %s384_s11, 128  ;;  %p592_p11 = scmp.lt.s32.totalorder %s384_s11, %s384_s11 }
  0x44   :  { %469 = vmatpush3.bf16.msra.mxu1 %v515_v19  ;;  %p588_p10 = scmp.ne.s32.totalorder %s384_s11, %s587_s12  ;;  %p593_p12 = scmp.lt.s32.totalorder %s587_s12, %s587_s12 }
  0x45   :  { %440 = vmatpush3.bf16.msra.mxu0 %v501_v8  ;;  %470 = vmatprep.subr.bf16.mxu1 %v622_v0 }
  0x46   :  { %441 = vmatprep.subr.bf16.mxu0 %v502_v9  ;;  %p594_p13 = por %p593_p12, %p592_p11 }
  0x48   :  { %471 = vmatpush3.bf16.msra.mxu1 %v516_v21  ;;  %p595_p0 = pnand %p594_p13, %p588_p10 }
  0x49   :  { %442 = vmatpush3.bf16.msra.mxu0 %v503_v10  ;;  %472 = vmatprep.subr.bf16.mxu1 %v622_v0 }
  0x4a   :  { %443 = vmatprep.subr.bf16.mxu0 %v504_v11 }
  0x4c   :  { %473 = vmatpush3.bf16.msra.mxu1 %v517_v23 }
  0x4d   :  { %444 = vmatpush3.bf16.msra.mxu0 %v505_v12  ;;  %474 = vmatprep.subr.bf16.mxu1 %v622_v0 }
  0x4e   :  { %445 = vmatprep.subr.bf16.mxu0 %v506_v15 }
  0x50   :  { %475 = vmatpush3.bf16.msra.mxu1 %v518_v24 }
  0x51   :  { %446 = vmatpush3.bf16.msra.mxu0 %v507_v17  ;;  %476 = vmatprep.subr.bf16.mxu1 %v622_v0 }
  0x52   :  { %447 = vmatprep.subr.bf16.mxu0 %v508_v18 }
  0x54   :  { %477 = vmatpush3.bf16.msra.mxu1 %v519_v25 }
  0x55   :  { %448 = vmatpush3.bf16.msra.mxu0 %v509_v20  ;;  %478 = vmatprep.subr.bf16.mxu1 %v622_v0 }
  0x58   :  { %243 = vmatmul.mubr.bf16.vlgmr.msra.gmra.mrb[0].mxu0 %v510_v22  ;;  %479 = vmatpush3.bf16.msra.mxu1 %v520_v26 }
 0x12b   :  { %v449_v27 = vpop.f32.mrb[0].mxu0 }
 0x12c   :  { %v450_v29 = vpop.f32.mrb[1].mxu0 }
 0x12d   :  { %v451_v30 = vadd.f32 %v450_v29, %v449_v27  ;;  %v452_v31 = vpop.f32.mrb[2].mxu0 }
 0x12e   :  { %v453_v32 = vpop.f32.mrb[3].mxu0 }
 0x12f   :  { %v245_v33 = vadd.f32 %v451_v30, %v396_v28  ;;  %v454_v34 = vadd.f32 %v453_v32, %v452_v31 }
 0x131   :  { %v248_v35 = vadd.f32 %v454_v34, %v396_v28  ;;  %v251_v36 = vmax.f32 %v245_v33, 0.0 }
 0x133   :  { %v252_v37 = vmax.f32 %v248_v35, 0.0 }
 0x135   :  { %v253_v38 = vpack.c.bf16 %v252_v37, %v251_v36 }
 0x137   :  { %481 = vmatmul.mubr.bf16.vlgmr.msra.gmra.mrb[0].mxu1 %v253_v38 }
 0x20a   :  { %v359_v40 = vpop.f32.mrb[0].mxu1 }
 0x20b   :  { %v360_v41 = vadd.f32 %v415_v39, %v359_v40  ;;  %v482_v42 = vpop.f32.mrb[1].mxu1 }
 0x20c   :  { %v362_v43 = vpop.f32.mrb[2].mxu1 }
 0x20d   :  { %v363_v44 = vadd.f32 %v415_v39, %v362_v43  ;;  %v483_v45 = vpop.f32.mrb[3].mxu1  ;;  %v366_v46 = vmax.f32 %v360_v41, 0.0 }
 0x20f   :  { %v367_v47 = vmax.f32 %v363_v44, 0.0 }
 0x211   :  { %v431_v48 = vpack.c.bf16 %v367_v47, %v366_v46 }
 0x213   :  { %432 = vst [vmem:[#allocation8] sm:$0xff] %v431_v48  }
 0x214   :  { %598 = shalt.err (!%p595_p0)
}
 0x215   :  { %s599_s14 = scalar_lea.hbm %s723_s5, 128 }
 0x216   :  { %p600_p1 = scmp.ne.s32.totalorder %s723_s5, %s599_s14  ;;  %p603_p2 = scmp.lt.u32.totalorder %s599_s14, %s723_s5 }
 0x218   :  { %p605_p3 = pnand %p603_p2, %p600_p1 }
 0x21a   :  { %608 = shalt.err (!%p605_p3)
}
 0x21b   :  { %389 = dma.vmem_to_hbm [thread:$0]  %s384_s11, 128, %s723_s5, [#allocation4], %s616_s28, %s616_s28, %s617_s29  }
 0x21c   :  { %613 = dma.done.wait [#allocation4], 128  }
 0x21d   :  { %614 = vsyncadd [#allocation4], 4294967168 }
 0x21e   :  { %393 = vsyncpa [#allocation3], 1 }
 0x21f   :  { %394 = vsyncpa [#allocation6], 1 }
 0x220   :  { %395 = vsyncpa [#allocation4], 1 }

</bundles_post_ra>
